<compile_context>
chip_gen: v7x
topology: tpu7x:2x2x1
jax: 0.10.0
libtpu: 0.0.40
codegen_flags: <defaults>
</compile_context>

<pallas_src>
import jax
import jax.numpy as jnp
from jax.experimental import pallas as pl
from jax.experimental.pallas import tpu as pltpu


def attflat_kernel(x_ref, m_ref, w_ref, b_ref, o_ref):
    # x_ref : (1, TB*S, H)  bf16  input rows for this grid step
    # m_ref : (1, TB*S, 1)  f32   mask (0.0 == masked / padding)
    # w_ref : (H, H)        bf16  Linear weight, pre-transposed to (in, out)
    # b_ref : (1, H)        f32   Linear bias
    # o_ref : (1, TB, H)    f32   per-batch-row outputs for this grid step
    tb, h = o_ref.shape[1], o_ref.shape[2]
    s = x_ref.shape[1] // tb

    x = x_ref[0]                                                    # (TB*S, H) bf16

    # MLP: Linear (bf16 MXU, f32 accumulate) + bias + ReLU (dropout == identity).
    att = jnp.dot(x, w_ref[...], preferred_element_type=jnp.float32)
    att = att + b_ref[...]
    att = jnp.maximum(att, 0.0)                                     # (TB*S, H) f32

    # masked_fill_: rows whose mask == 0 get -1e9 across the feature dim.
    att = jnp.where(m_ref[0] == 0.0, -1.0e9, att)

    # softmax over the feature axis (dim=-1, exactly as in the PyTorch module).
    att_max = jnp.max(att, axis=-1, keepdims=True)
    e = jnp.exp(att - att_max)
    denom = jnp.sum(e, axis=-1, keepdims=True)
    p = e * pl.reciprocal(denom, approx=True)                       # EUP reciprocal

    # output[b, :] = sum_s p[b, s, :] * x[b, s, :]
    prod = p * x.astype(jnp.float32)                                # (TB*S, H) f32
    out = jnp.sum(prod.reshape(tb, s, h), axis=1)                   # (TB, H)  sublane reduce
    o_ref[0] = out.astype(o_ref.dtype)


def _pick_block_b(B, S):
    """Batch rows per grid step: fill the MXU M dim, keep >=2 grid steps if possible."""
    tb = max(1, 256 // max(S, 1))       # aim for ~256 rows of TB*S per matmul
    tb = min(tb, B)
    if B >= 2:
        tb = min(tb, pl.cdiv(B, 2))     # leave >=2 grid steps (v7x: 2 TensorCores)
    return max(tb, 1)


def att_flat_nofc(x, input_mask, weight, bias, *, block_b=None):
    """x: (B, S, H) f32; input_mask: (B, S); weight: (H, H) [out, in]; bias: (H,)."""
    B, S, H = x.shape
    tb = _pick_block_b(B, S) if block_b is None else block_b
    G = pl.cdiv(B, tb)
    B_pad = G * tb

    # Pad the batch so it tiles evenly (padded rows: x = 0, mask = 0 -> output 0,
    # sliced off below; no NaNs since a fully-masked row softmaxes to uniform).
    if B_pad != B:
        x = jnp.pad(x, ((0, B_pad - B), (0, 0), (0, 0)))
        input_mask = jnp.pad(input_mask, ((0, B_pad - B), (0, 0)))

    # bf16 matmul operands (halves x/W DMA); everything else stays f32.
    x_bf = x.astype(jnp.bfloat16).reshape(G, tb * S, H)             # contiguous merge
    m3 = input_mask.astype(jnp.float32).reshape(G, tb * S, 1)
    w_t = weight.T.astype(jnp.bfloat16)                             # (H_in, H_out)
    b2 = bias.reshape(1, H).astype(jnp.float32)

    out = pl.pallas_call(
        attflat_kernel,
        out_shape=jax.ShapeDtypeStruct((G, tb, H), jnp.float32),
        grid_spec=pltpu.PrefetchScalarGridSpec(
            num_scalar_prefetch=0,
            grid=(G,),
            in_specs=[
                pl.BlockSpec((1, tb * S, H), lambda g: (g, 0, 0)),  # input rows
                pl.BlockSpec((1, tb * S, 1), lambda g: (g, 0, 0)),  # mask
                pl.BlockSpec((H, H), lambda g: (0, 0)),             # weight (resident)
                pl.BlockSpec((1, H), lambda g: (0, 0)),             # bias (resident)
            ],
            out_specs=pl.BlockSpec((1, tb, H), lambda g: (g, 0, 0)),
        ),
        compiler_params=pltpu.CompilerParams(
            dimension_semantics=("parallel",),
            vmem_limit_bytes=64 * 1024 * 1024,
        ),
    )(x_bf, m3, w_t, b2)

    return out.reshape(B_pad, H)[:B]


if __name__ == "__main__":
    key = jax.random.PRNGKey(0)
    B, S, H = 2, 8, 32          # batch, seq, hidden (in_size == out_size == H)
    k1, k2, k3, k4 = jax.random.split(key, 4)

    x = jax.random.normal(k1, (B, S, H), dtype=jnp.float32)
    # mask: 1.0 = valid token, 0.0 = padding (module masks where input_mask == 0)
    input_mask = (jax.random.uniform(k2, (B, S)) > 0.25).astype(jnp.float32)

    # Deterministic Linear params (PyTorch-style uniform(-1/sqrt(in), 1/sqrt(in)))
    bound = 1.0 / (H ** 0.5)
    weight = jax.random.uniform(k3, (H, H), minval=-bound, maxval=bound,
                                dtype=jnp.float32)   # (out, in)
    bias = jax.random.uniform(k4, (H,), minval=-bound, maxval=bound,
                              dtype=jnp.float32)

    out = att_flat_nofc(x, input_mask, weight, bias)
    out = jax.block_until_ready(out)

    # Pure-JAX reference (mirrors the kernel's bf16 matmul; exact softmax divide).
    x_bf = x.astype(jnp.bfloat16)
    w_bf = weight.astype(jnp.bfloat16)
    att_ref = jnp.dot(x_bf.reshape(B * S, H), w_bf.T,
                      preferred_element_type=jnp.float32).reshape(B, S, H)
    att_ref = jnp.maximum(att_ref + bias, 0.0)
    att_ref = jnp.where((input_mask == 0.0)[:, :, None], -1.0e9, att_ref)
    att_ref = jax.nn.softmax(att_ref, axis=-1)
    ref = jnp.sum(att_ref * x_bf.astype(jnp.float32), axis=1)

    assert out.shape == (B, H)
    # Tolerance covers the approximate EUP reciprocal in the kernel's softmax.
    assert jnp.allclose(out, ref, atol=2e-2, rtol=2e-2), \
        float(jnp.max(jnp.abs(out - ref)))
    print("KERNEL_OK")
</pallas_src>

<mosaic_0001>
module attributes {stable_mosaic.version = 11 : i64} {
  func.func @attflat_kernel(%arg0: i32, %arg1: memref<1x8x32xbf16, #tpu.memory_space<vmem>>, %arg2: memref<1x8x1xf32, #tpu.memory_space<vmem>>, %arg3: memref<32x32xbf16, #tpu.memory_space<vmem>>, %arg4: memref<1x32xf32, #tpu.memory_space<vmem>>, %arg5: memref<1x1x32xf32, #tpu.memory_space<vmem>>) attributes {dimension_semantics = [#tpu.dimension_semantics<parallel>], iteration_bounds = array<i64: 2>, scalar_prefetch = 0 : i64, scratch_operands = 0 : i64, tpu.core_type = #tpu.core_type<tc>, window_params = [{transform_indices = @transform_0, window_bounds = array<i64: 1, 8, 32>}, {transform_indices = @transform_1, window_bounds = array<i64: 1, 8, 1>}, {pipeline_mode = #tpu.pipeline_mode<synchronous>, transform_indices = @transform_2, window_bounds = array<i64: 32, 32>}, {pipeline_mode = #tpu.pipeline_mode<synchronous>, transform_indices = @transform_3, window_bounds = array<i64: 1, 32>}, {transform_indices = @transform_4, window_bounds = array<i64: 1, 1, 32>}]} {
    %c0 = arith.constant 0 : index
    %c0_0 = arith.constant 0 : index
    %c0_1 = arith.constant 0 : index
    %0 = vector.load %arg1[%c0, %c0_0, %c0_1] : memref<1x8x32xbf16, #tpu.memory_space<vmem>>, vector<1x8x32xbf16>
    %1 = vector.shape_cast %0 : vector<1x8x32xbf16> to vector<8x32xbf16>
    %c0_2 = arith.constant 0 : index
    %c0_3 = arith.constant 0 : index
    %2 = vector.load %arg3[%c0_2, %c0_3] : memref<32x32xbf16, #tpu.memory_space<vmem>>, vector<32x32xbf16>
    %cst = arith.constant dense<0.000000e+00> : vector<8x32xf32>
    %3 = tpu.matmul %1, %2, %cst {dimension_numbers = #tpu.dot_dimension_numbers<[1], [0], [0], [1], [0, 0, 1, 1], [], []>} : vector<8x32xbf16>, vector<32x32xbf16>, vector<8x32xf32> -> vector<8x32xf32>
    %c0_4 = arith.constant 0 : index
    %c0_5 = arith.constant 0 : index
    %4 = vector.load %arg4[%c0_4, %c0_5] : memref<1x32xf32, #tpu.memory_space<vmem>>, vector<1x32xf32>
    %5 = vector.broadcast %4 : vector<1x32xf32> to vector<8x32xf32>
    %6 = arith.addf %3, %5 : vector<8x32xf32>
    %cst_6 = arith.constant 0.000000e+00 : f32
    %7 = vector.broadcast %cst_6 : f32 to vector<8x32xf32>
    %8 = arith.maximumf %6, %7 : vector<8x32xf32>
    %c0_7 = arith.constant 0 : index
    %c0_8 = arith.constant 0 : index
    %c0_9 = arith.constant 0 : index
    %9 = vector.load %arg2[%c0_7, %c0_8, %c0_9] : memref<1x8x1xf32, #tpu.memory_space<vmem>>, vector<1x8x1xf32>
    %10 = vector.shape_cast %9 : vector<1x8x1xf32> to vector<8x1xf32>
    %cst_10 = arith.constant 0.000000e+00 : f32
    %11 = vector.broadcast %cst_10 : f32 to vector<8x1xf32>
    %12 = arith.cmpf oeq, %10, %11 : vector<8x1xf32>
    %cst_11 = arith.constant -1.000000e+09 : f32
    %13 = vector.shape_cast %12 : vector<8x1xi1> to vector<8x1xi1>
    %14 = vector.broadcast %13 : vector<8x1xi1> to vector<8x32xi1>
    %15 = vector.broadcast %cst_11 : f32 to vector<8x32xf32>
    %16 = arith.select %14, %15, %8 : vector<8x32xi1>, vector<8x32xf32>
    %cst_12 = arith.constant dense<0xFF800000> : vector<8xf32>
    %17 = vector.multi_reduction <maximumf>, %16, %cst_12 [1] : vector<8x32xf32> to vector<8xf32>
    %18 = vector.shape_cast %17 : vector<8xf32> to vector<8x1xf32>
    %19 = vector.broadcast %18 : vector<8x1xf32> to vector<8x32xf32>
    %20 = arith.subf %16, %19 : vector<8x32xf32>
    %21 = math.exp %20 : vector<8x32xf32>
    %cst_13 = arith.constant dense<0.000000e+00> : vector<8xf32>
    %22 = vector.multi_reduction <add>, %21, %cst_13 [1] : vector<8x32xf32> to vector<8xf32>
    %23 = vector.shape_cast %22 : vector<8xf32> to vector<8x1xf32>
    %24 = tpu.reciprocal %23 {approx = true} : vector<8x1xf32> -> vector<8x1xf32>
    %25 = vector.broadcast %24 : vector<8x1xf32> to vector<8x32xf32>
    %26 = arith.mulf %21, %25 : vector<8x32xf32>
    %27 = arith.extf %1 : vector<8x32xbf16> to vector<8x32xf32>
    %28 = arith.mulf %26, %27 : vector<8x32xf32>
    %29 = vector.shape_cast %28 : vector<8x32xf32> to vector<1x8x32xf32>
    %cst_14 = arith.constant dense<0.000000e+00> : vector<1x32xf32>
    %30 = vector.multi_reduction <add>, %29, %cst_14 [1] : vector<1x8x32xf32> to vector<1x32xf32>
    %c0_15 = arith.constant 0 : index
    %c0_16 = arith.constant 0 : index
    %c0_17 = arith.constant 0 : index
    %31 = vector.load %arg5[%c0_15, %c0_16, %c0_17] : memref<1x1x32xf32, #tpu.memory_space<vmem>>, vector<1x1x32xf32>
    %32 = vector.shape_cast %31 : vector<1x1x32xf32> to vector<1x32xf32>
    %33 = vector.shape_cast %30 : vector<1x32xf32> to vector<1x1x32xf32>
    tpu.vector_store %arg5[%c0_15, %c0_16, %c0_17], %33 {strides = array<i32>} : memref<1x1x32xf32, #tpu.memory_space<vmem>>, vector<1x1x32xf32>,
    return
  }
  func.func @transform_0(%arg0: i32) -> (i32, i32, i32) {
    %c0_i32 = arith.constant 0 : i32
    %c0_i32_0 = arith.constant 0 : i32
    %c0_i32_1 = arith.constant 0 : i32
    return %arg0, %c0_i32, %c0_i32_0 : i32, i32, i32
  }
  func.func @transform_1(%arg0: i32) -> (i32, i32, i32) {
    %c0_i32 = arith.constant 0 : i32
    %c0_i32_0 = arith.constant 0 : i32
    %c0_i32_1 = arith.constant 0 : i32
    return %arg0, %c0_i32, %c0_i32_0 : i32, i32, i32
  }
  func.func @transform_2(%arg0: i32) -> (i32, i32) {
    %c0_i32 = arith.constant 0 : i32
    %c0_i32_0 = arith.constant 0 : i32
    %c0_i32_1 = arith.constant 0 : i32
    return %c0_i32, %c0_i32_0 : i32, i32
  }
  func.func @transform_3(%arg0: i32) -> (i32, i32) {
    %c0_i32 = arith.constant 0 : i32
    %c0_i32_0 = arith.constant 0 : i32
    %c0_i32_1 = arith.constant 0 : i32
    return %c0_i32, %c0_i32_0 : i32, i32
  }
  func.func @transform_4(%arg0: i32) -> (i32, i32, i32) {
    %c0_i32 = arith.constant 0 : i32
    %c0_i32_0 = arith.constant 0 : i32
    %c0_i32_1 = arith.constant 0 : i32
    return %arg0, %c0_i32, %c0_i32_0 : i32, i32, i32
  }
}

</mosaic_0001>

<bundles_post_ra>
// kernel: tpu_custom_call.1
= control target key start
LH: loop header
LB: loop body
LE: loop exit
PB: predicated region body
PF: predicated region fallthrough
CT: control target
= control target key end

     0   :  { %9 = vsyncpa [#allocation3], 0  ;;  %s1124_s0 = inlined_call_operand.hbm [shape: bf16[2,8,32], index: 0, kind: input, shape index: {}]   ;;  %s1125_s1 = inlined_call_operand.hbm [shape: f32[2,8,1], index: 1, kind: input, shape index: {}]   ;;  %s1126_s2 = inlined_call_operand.hbm [shape: bf16[32,32], index: 2, kind: input, shape index: {}]   ;;  %s1127_s3 = inlined_call_operand.hbm [shape: f32[1,32], index: 3, kind: input, shape index: {}]   ;;  %s1128_s4 = inlined_call_operand.hbm [shape: f32[2,1,32], index: 4, kind: output, shape index: {}]  }
   0x1   :  { %11 = vsyncpa [#allocation3 + $0x1], 0 }
   0x2   :  { %12 = vsyncpa [#allocation6], 0 }
   0x3   :  { %14 = vsyncpa [#allocation6 + $0x1], 0 }
   0x4   :  { %15 = vsyncpa [#allocation9], 0 }
   0x5   :  { %16 = vsyncpa [#allocation4], 0 }
   0x6   :  { %18 = vsyncpa [#allocation4 + $0x1], 0  ;;  %s844_s15 = smov 0   ;;  %s846_s16 = smov 0  }
   0x7   :  { %s848_s17 = smov 0   ;;  %s850_s18 = smov 0  }
   0x8 LB: > { %s865_s19 = sadd.s32 4294967295, %s807_s18   ;;  %s497_s20 = sadd.s32 4294967294, %s807_s18   ;;  %s807_s18 = sphi %s850_s18, %s1152_s18   ;;  %s803_s17 = sphi %s848_s17, %s1151_s17   ;;  %s799_s16 = sphi %s846_s16, %s1150_s16   ;;  %s795_s15 = sphi %s844_s15, %s1149_s15  }
   0x9   : > { %p44_p0 = scmp.ne.s32.totalorder %s799_s16, %s795_s15  ;;  %p1129_p1 = scmp.eq.s32.totalorder %s865_s19, 0 }
   0xa   : > { %p142_p3 = scmp.eq.s32.totalorder %s497_s20, 1  ;;  %p498_p5 = scmp.ge.s32.totalorder %s807_s18, 1 }
   0xb   : > { %p874_p4 = por %p1129_p1, %p44_p0  ;;  %p149_p7 = scmp.lt.s32.totalorder %s807_s18, 3 }
   0xc   : > { %p879_p6 = por %p142_p3, %p44_p0  ;;  %s809_s24 = smov [#allocation7]  }
   0xd   : > { %s1133_s21 = scalar_select %p874_p4, 1, 0 }
   0xe   : > { %s1134_s22 = scalar_select %p879_p6, 1, 0 }
   0xf   : > { %p884_p8 = pnand %p498_p5, %p149_p7  ;;  %s161_s25 = sshll.u32 %s809_s24, 4  ;;  %s888_s25 = int_to_ptr.vmem [resolvable:$true] %s161_s25 }
  0x10   : > { %s810_s27 = smov [#allocation8]   ;;  %s613_s5 = scalar_lea.hbm %s1126_s2, 256 }
  0x11   : > { %s1135_s23 = scalar_select %p884_p8, 1, 0 }
  0x12   : > { %p543_p9 = pneg %p884_p8  ;;  %s175_s28 = sshll.u32 %s810_s27, 4  ;;  %s899_s28 = int_to_ptr.vmem [resolvable:$true] %s175_s28 }
  0x13   : > { %p614_p12 = scmp.ne.s32.totalorder %s1126_s2, %s613_s5  ;;  %p620_p5 = scmp.lt.u32.totalorder %s613_s5, %s1126_s2 }
  0x14   : > { %p895_p11 = pnand %p543_p9, %p1129_p1 }
  0x16   : > { %p615_p13 = pneg %p895_p11 }
  0x18   : > { %p616_p0 = pnand %p615_p13, %p614_p12 }
  0x1a   : > { %p617_p3 = pneg %p616_p0 }
  0x1c   : > { %p622_p7 = pnand %p620_p5, %p617_p3 }
  0x1e   : > { %625 = shalt.err (!%p622_p7)
}
  0x1f   : > { %s626_s10 = scalar_lea.vmem %s888_s25, 256  ;;  %p634_p2 = scmp.lt.s32.totalorder %s888_s25, %s888_s25 }
  0x20   : > { %p627_p9 = scmp.ne.s32.totalorder %s888_s25, %s626_s10  ;;  %p635_p12 = scmp.lt.s32.totalorder %s626_s10, %s626_s10 }
  0x22   : > { %p629_p10 = pnand %p627_p9, %p615_p13  ;;  %p636_p0 = por %p635_p12, %p634_p2 }
  0x24   : > { %p630_p1 = pneg %p629_p10 }
  0x26   : > { %p637_p6 = pnand %p636_p0, %p630_p1 }
  0x28   : > { %640 = shalt.err (!%p637_p6)
}
  0x29   : > { %s811_s11 = smov 64   ;;  %s812_s12 = smov 4  }
  0x2a   : > { %546 = dma.hbm_to_vmem [thread:$0]  (!%p895_p11), %s1126_s2, 256, %s888_s25, [#allocation6], %s811_s11, %s811_s11, %s812_s12  }
  0x2b   : > { %s641_s27 = scalar_lea.hbm %s1127_s3, 16 }
  0x2c   : > { %p642_p2 = scmp.ne.s32.totalorder %s1127_s3, %s641_s27  ;;  %p648_p10 = scmp.lt.u32.totalorder %s641_s27, %s1127_s3 }
  0x2e   : > { %p644_p1 = pnand %p642_p2, %p615_p13 }
  0x30   : > { %p645_p6 = pneg %p644_p1 }
  0x32   : > { %p650_p3 = pnand %p648_p10, %p645_p6 }
  0x34   : > { %653 = shalt.err (!%p650_p3)
}
  0x35   : > { %s654_s25 = scalar_lea.vmem %s899_s28, 16  ;;  %s661_s7 = scalar_lea.vmem %s899_s28, 32 }
  0x36   : > { %p655_p5 = scmp.ne.s32.totalorder %s899_s28, %s654_s25  ;;  %p662_p12 = scmp.lt.s32.totalorder %s899_s28, %s899_s28 }
  0x37   : > { %p663_p0 = scmp.lt.s32.totalorder %s661_s7, %s654_s25 }
  0x38   : > { %p657_p7 = pnand %p655_p5, %p615_p13 }
  0x39   : > { %p664_p2 = por %p663_p0, %p662_p12 }
  0x3a   : > { %p658_p9 = pneg %p657_p7 }
  0x3c   : > { %p665_p1 = pnand %p664_p2, %p658_p9 }
  0x3e   : > { %668 = shalt.err (!%p665_p1)
}
  0x3f   : > { %549 = dma.hbm_to_vmem [thread:$0]  (!%p895_p11), %s1127_s3, 16, %s899_s28, [#allocation9]  }
  0x40   : > { %s955_s10 = sadd.s32 1, %s807_s18   ;;  %s31_s26 = sadd.s32 1, %s803_s17 }
  0x41   : > { %s28_s11 = ssub.s32 %s807_s18, %s955_s10  ;;  %p38_p13 = scmp.ne.s32.totalorder %s803_s17, %s799_s16 }
  0x42   : > { %p29_p6 = scmp.eq.s32.totalorder %s28_s11, 0  ;;  %p39_p10 = scmp.eq.s32.totalorder %s807_s18, 0 }
  0x43   : > { %p1137_p3 = scmp.eq.s32.totalorder %s865_s19, 1  ;;  %p563_p7 = scmp.lt.s32.totalorder %s807_s18, 2 }
  0x44   : > { %s971_s13 = scalar_select %p29_p6, %s803_s17, %s31_s26  }
  0x45   : > { %p965_p5 = por %p1137_p3, %p38_p13  ;;  %p40_p9 = por %p39_p10, %p38_p13 }
  0x46   : > { %s974_s14 = sand.u32 1, %s803_s17   ;;  %s503_s20 = sshll.u32 %s807_s18, 6 }
  0x47   : > { %s1138_s12 = scalar_select %p965_p5, 1, 0 }
  0x48   : > { %s502_s28 = sshll.u32 %s974_s14, 2  ;;  %s981_s29 = scalar_lea.hbm %s1124_s0, %s503_s20 }
  0x49   : > { %s190_s30 = scalar_lea.vmem [#allocation2], %s502_s28  ;;  %p985_p11 = pnand %p563_p7, %p40_p9 }
  0x4a   : > { %s197_s5 = sshll.u32 %s190_s30, 4  ;;  %s204_s25 = sand.u32 1, %s807_s18   ;;  %s983_s5 = int_to_ptr.vmem [resolvable:$true] %s197_s5 }
  0x4b   : > { %s504_s7 = sshll.u32 %s974_s14, 3  ;;  %s187_s8 = scalar_lea.sflag [#allocation3], %s974_s14 }
  0x4c   : > { %s669_s9 = scalar_lea.hbm %s981_s29, 64  ;;  %p671_p0 = pneg %p985_p11 }
  0x4d   : > { %p670_p12 = scmp.ne.s32.totalorder %s981_s29, %s669_s9  ;;  %s674_s28 = scalar_lea.hbm %s1124_s0, 128 }
  0x4e   : > { %p675_p13 = scmp.lt.u32.totalorder %s981_s29, %s1124_s0  ;;  %p676_p6 = scmp.lt.u32.totalorder %s674_s28, %s669_s9 }
  0x4f   : > { %p672_p2 = pnand %p671_p0, %p670_p12  ;;  %p678_p3 = scmp.lt.u32.totalorder %s669_s9, %s981_s29 }
  0x50   : > { %p677_p10 = por %p676_p6, %p675_p13 }
  0x51   : > { %p673_p1 = pneg %p672_p2 }
  0x52   : > { %p679_p7 = por %p678_p3, %p677_p10 }
  0x54   : > { %p680_p9 = pnand %p679_p7, %p673_p1 }
  0x56   : > { %683 = shalt.err (!%p680_p9)
}
  0x57   : > { %s684_s27 = scalar_lea.vmem %s983_s5, 64  ;;  %s813_s30 = smov [#allocation2]  }
  0x58   : > { %p685_p12 = scmp.ne.s32.totalorder %s983_s5, %s684_s27  ;;  %s689_s26 = sshll.u32 %s813_s30, 4  ;;  %s690_s26 = int_to_ptr.vmem [resolvable:$false] %s689_s26 }
  0x59   : > { %s691_s11 = scalar_lea.vmem %s690_s26, 128  ;;  %p692_p4 = scmp.lt.s32.totalorder %s983_s5, %s690_s26 }
  0x5a   : > { %p687_p2 = pnand %p685_p12, %p671_p0  ;;  %p693_p13 = scmp.lt.s32.totalorder %s691_s11, %s684_s27 }
  0x5c   : > { %p688_p5 = pneg %p687_p2  ;;  %p694_p6 = por %p693_p13, %p692_p4 }
  0x5e   : > { %p695_p10 = pnand %p694_p6, %p688_p5 }
  0x60   : > { %698 = shalt.err (!%p695_p10)
}
  0x61   : > { %553 = dma.hbm_to_vmem [thread:$0]  (!%p985_p11), %s981_s29, 64, %s983_s5, %s187_s8  }
  0x62   : > { %s505_s9 = sshll.u32 %s807_s18, 7  ;;  %s208_s27 = scalar_lea.vmem [#allocation5], %s504_s7 }
  0x63   : > { %s1021_s24 = scalar_lea.hbm %s1125_s1, %s505_s9  ;;  %s215_s30 = sshll.u32 %s208_s27, 4  ;;  %s216_s30 = int_to_ptr.vmem [resolvable:$true] %s215_s30 }
  0x64   : > { %s205_s26 = scalar_lea.sflag [#allocation6], %s204_s25  ;;  %s699_s11 = scalar_lea.hbm %s1021_s24, 128 }
  0x65   : > { %p700_p4 = scmp.ne.s32.totalorder %s1021_s24, %s699_s11  ;;  %s704_s8 = scalar_lea.hbm %s1125_s1, 256 }
  0x66   : > { %p705_p3 = scmp.lt.u32.totalorder %s1021_s24, %s1125_s1  ;;  %p706_p7 = scmp.lt.u32.totalorder %s704_s8, %s699_s11 }
  0x67   : > { %p702_p5 = pnand %p700_p4, %p671_p0  ;;  %p708_p12 = scmp.lt.u32.totalorder %s699_s11, %s1021_s24 }
  0x68   : > { %p707_p9 = por %p706_p7, %p705_p3 }
  0x69   : > { %p703_p1 = pneg %p702_p5 }
  0x6a   : > { %p709_p2 = por %p708_p12, %p707_p9 }
  0x6c   : > { %p710_p13 = pnand %p709_p2, %p703_p1 }
  0x6e   : > { %713 = shalt.err (!%p710_p13)
}
  0x6f   : > { %s714_s25 = scalar_lea.vmem %s216_s30, 128  ;;  %s814_s7 = smov [#allocation5]  }
  0x70   : > { %p715_p6 = scmp.ne.s32.totalorder %s216_s30, %s714_s25  ;;  %s719_s28 = sshll.u32 %s814_s7, 4  ;;  %s720_s28 = int_to_ptr.vmem [resolvable:$false] %s719_s28 }
  0x71   : > { %s721_s20 = scalar_lea.vmem %s720_s28, 256  ;;  %p722_p5 = scmp.lt.s32.totalorder %s216_s30, %s720_s28 }
  0x72   : > { %p717_p10 = pnand %p715_p6, %p671_p0  ;;  %p723_p8 = scmp.lt.s32.totalorder %s721_s20, %s714_s25 }
  0x74   : > { %p718_p4 = pneg %p717_p10  ;;  %p724_p3 = por %p723_p8, %p722_p5 }
  0x76   : > { %p725_p7 = pnand %p724_p3, %p718_p4 }
  0x78   : > { %728 = shalt.err (!%p725_p7)
}
  0x79   : > { %556 = dma.hbm_to_vmem [thread:$0]  (!%p985_p11), %s1021_s24, 128, %s216_s30, %s205_s26  }
  0x7a   : > { %p1140_p1 = scmp.ne.s32.totalorder %s1135_s23, 0 }
  0x7b   : > { %s1049_s27 = sand.u32 (!%p1140_p1), 1, %s799_s16   ;;  %p1141_p0 = scmp.ne.s32.totalorder (!%p1140_p1), %s1133_s21, 0 }
  0x7c   : > { %224 = sbr.rel (%p1140_p1) target bundleno = 710 (0x2c6), region = 36  ;;  %s507_s11 = sshll.u32 (!%p1140_p1), %s1049_s27, 2 }
  0x7d   : > { %s227_s29 = scalar_lea.sflag (!%p1140_p1), [#allocation3], %s1049_s27  ;;  %s230_s5 = scalar_lea.vmem (!%p1140_p1), [#allocation2], %s507_s11 }
  0x83   : > { %774 = dma.done.wait (%p1141_p0), %s227_s29, 64  }
  0x84   : > { %776 = vsyncadd (%p1141_p0), %s227_s29, 4294967232  ;;  %s235_s6 = sand.u32 1, %s865_s19   ;;  %s508_s23 = sshll.u32 %s1049_s27, 3 }
  0x85   : > { %s236_s24 = scalar_lea.sflag [#allocation6], %s235_s6  ;;  %s239_s30 = scalar_lea.vmem [#allocation5], %s508_s23 }
  0x86   : > { %778 = dma.done.wait (%p1141_p0), %s236_s24, 128  }
  0x87   : > { %780 = vsyncadd (%p1141_p0), %s236_s24, 4294967168  ;;  %p1142_p8 = scmp.eq.s32.totalorder %s865_s19, 0 }
  0x89   : > { %782 = dma.done.wait (%p1142_p8), [#allocation6], 256   ;;  %p1143_p11 = pmov %p1142_p8 }
  0x8a   : > { %p1144_p9 = pmov %p1142_p8 }
  0x8b   : > { %784 = vsyncadd (%p1143_p11), [#allocation6], 4294967040 }
  0x8c   : > { %786 = dma.done.wait (%p1144_p9), [#allocation9], 16   ;;  %p1145_p12 = pmov %p1142_p8 }
  0x8d   : > { %v815_v0 = vmov 0.0   ;;  %vm816_vm0 = vmmov 0   ;;  %v817_v1 = vmov 0   ;;  %v607_v2 = vld [vmem:[#allocation7] sm:$0xff]   ;;  %v608_v3 = vld [vmem:[#allocation7 + $0x8] sm:$0xff]   ;;  %v346_v4 = vld [vmem:[%s239_s30] sm:$0xff] }
  0x8e   : > { %788 = vsyncadd (%p1145_p12), [#allocation9], 4294967280  ;;  %521 = vmatprep.subr.bf16.mxu0 %v815_v0  ;;  %525 = vmatprep.mubr.msk.bf16.mxu0 %vm816_vm0, %v815_v0  ;;  %vm347_vm1 = vcmp.eq.f32.partialorder %v346_v4, 0.0  ;;  %v277_v6 = vld [vmem:[%s230_s5] sm:$0xf]  ;;  %vm301_vm2 = vcmask 261120  }
  0x8f   : > { %606 = vset.pattern.permute.xlu0 %v817_v1  ;;  %522 = vmatpush3.bf16.msra.mxu0 %v607_v2  ;;  %v348_v5 = vsel %vm347_vm1, 1, %v817_v1  ;;  %v511_v7 = vld [vmem:[#allocation8] ss:$0 sm:$0xff]  ;;  %v365_v23 = vunpack.c.l.bf16 %v277_v6  ;;  %s515_s21 = sshll.u32 %s865_s19, 4  ;;  %s275_s26 = scalar_lea.vmem [#allocation10], %s1049_s27  ;;  %vm374_vm4 = vcmask 253952  }
  0x90   : > { %523 = vmatprep.subr.bf16.mxu0 %v815_v0  ;;  %350 = vperm.xlu0 %606, %v348_v5   ;;  %s389_s8 = sshll.u32 %s275_s26, 4  ;;  %s1080_s25 = scalar_lea.hbm %s1128_s4, %s515_s21  ;;  %s1082_s8 = int_to_ptr.vmem [resolvable:$true] %s389_s8 }
  0x91   : > { %s377_s7 = scalar_lea.sflag [#allocation4], %s1049_s27  ;;  %s729_s28 = scalar_lea.vmem %s1082_s8, 16 }
  0x92   : > { %p730_p2 = scmp.ne.s32.totalorder %s1082_s8, %s729_s28  ;;  %p1146_p13 = scmp.ne.s32.totalorder %s1138_s12, 0 }
  0x93   : > { %524 = vmatpush3.bf16.msra.mxu0 %v608_v3  ;;  %s818_s19 = smov [#allocation10]  }
  0x94   : > { %p731_p6 = pnand %p730_p2, %p1146_p13  ;;  %s733_s20 = sshll.u32 %s818_s19, 4  ;;  %s734_s20 = int_to_ptr.vmem [resolvable:$false] %s733_s20 }
  0x95   : > { %s735_s11 = scalar_lea.vmem %s734_s20, 32  ;;  %p736_p4 = scmp.lt.s32.totalorder %s1082_s8, %s734_s20 }
  0x96   : > { %526 = vmatmul.mubr.msk.bf16.vlgmr.msra.gmra.mrb[0].mxu0 %vm301_vm2, %v277_v6  ;;  %p732_p10 = pneg %p731_p6  ;;  %p737_p5 = scmp.lt.s32.totalorder %s735_s11, %s729_s28 }
  0x98   : > { %p738_p3 = por %p737_p5, %p736_p4 }
  0x9a   : > { %p739_p7 = pnand %p738_p3, %p732_p10 }
 0x10f   : > { %v351_v8 = vpop.permute.xlu0 %350 }
 0x110   : > { %vm352_vm3 = vcmp.eq.s32.totalorder %v351_v8, 1 }
 0x169   : > { %v339_v9 = vpop.f32.mrb[0].mxu0 }
 0x16a   : > { %v340_v10 = vadd.f32 %v511_v7, %v339_v9  ;;  %v527_v11 = vpop.f32.mrb[1].mxu0 }
 0x16b   : > { %v342_v12 = vpop.f32.mrb[2].mxu0 }
 0x16c   : > { %v345_v13 = vmax.f32 %v340_v10, 0.0  ;;  %v528_v14 = vpop.f32.mrb[3].mxu0 }
 0x16e   : > { %v353_v15 = vsel %vm352_vm3, -1e+09, %v345_v13 }
 0x16f   : > { %v354_v16 = vsel %vm301_vm2, %v353_v15, -inf }
 0x170   : > { %355 = vmax.xlane.f32.xlu0 %v354_v16 }
 0x1fd   : > { %v356_v17 = vpop.xlane.xlu0 %355 }
 0x1fe   : > { %v357_v18 = vsub.f32 %v353_v15, %v356_v17 }
 0x200   : > { %v358_v19 = vmul.f32 1.442695, %v357_v18 }
 0x202   : > { %609 = vpow2.f32 %v358_v19 }
 0x20c   : > { %v610_v20 = vpop.eup %609 }
 0x20d   : > { %v360_v21 = vsel %vm301_vm2, %v610_v20, 0.0 }
 0x20e   : > { %361 = vadd.xlane.f32.xlu1 %v360_v21 }
 0x29b   : > { %v362_v22 = vpop.xlane.xlu1 %361 }
 0x29c   : > { %611 = vrcp.f32 %v362_v22 }
 0x2a6   : > { %v612_v24 = vpop.eup %611 }
 0x2a7   : > { %v364_v25 = vmul.f32 %v612_v24, %v610_v20 }
 0x2a9   : > { %v366_v26 = vmul.f32 %v365_v23, %v364_v25 }
 0x2ab   : > { %v367_v27 = vsel %vm301_vm2, %v366_v26, 0.0 }
 0x2ac   : > { %v368_v28 = vrot.slane %v367_v27, 4 }
 0x2ae   : > { %v369_v29 = vadd.f32 %v368_v28, %v367_v27 }
 0x2b0   : > { %v370_v30 = vrot.slane %v369_v29, 2 }
 0x2b2   : > { %v371_v31 = vadd.f32 %v370_v30, %v369_v29 }
 0x2b4   : > { %v372_v32 = vrot.slane %v371_v31, 1 }
 0x2b6   : > { %v373_v33 = vadd.f32 %v372_v32, %v371_v31 }
 0x2b8   : > { %375 = vst.msk [vmem:[%s275_s26] sm:$0x1] %vm374_vm4, %v373_v33 }
 0x2b9   : > { %742 = shalt.err (!%p739_p7)
}
 0x2ba   : > { %s743_s27 = scalar_lea.hbm %s1080_s25, 16  ;;  %s747_s6 = scalar_lea.hbm %s1128_s4, 32 }
 0x2bb   : > { %p744_p1 = scmp.ne.s32.totalorder %s1080_s25, %s743_s27  ;;  %p748_p11 = scmp.lt.u32.totalorder %s1080_s25, %s1128_s4 }
 0x2bc   : > { %p749_p9 = scmp.lt.u32.totalorder %s747_s6, %s743_s27  ;;  %p751_p2 = scmp.lt.u32.totalorder %s743_s27, %s1080_s25 }
 0x2bd   : > { %p745_p0 = pnand %p744_p1, %p1146_p13 }
 0x2be   : > { %p750_p12 = por %p749_p9, %p748_p11 }
 0x2bf   : > { %p746_p8 = pneg %p745_p0 }
 0x2c0   : > { %p752_p6 = por %p751_p2, %p750_p12 }
 0x2c2   : > { %p753_p10 = pnand %p752_p6, %p746_p8 }
 0x2c4   : > { %756 = shalt.err (!%p753_p10)
}
 0x2c5   : > { %541 = dma.vmem_to_hbm [thread:$0]  (%p1146_p13), %s1082_s8, 16, %s1080_s25, %s377_s7  }
 0x2c6 PF: > { %s401_s30 = sand.u32 1, %s795_s15   ;;  %p1147_p4 = scmp.ne.s32.totalorder %s1134_s22, 0 }
 0x2c7   : > { %p1148_p5 = scmp.ge.s32.totalorder %s807_s18, 2  ;;  %s402_s21 = scalar_lea.sflag [#allocation4], %s401_s30 }
 0x2c9   : > { %p558_p3 = pnand %p1148_p5, %p1147_p4 }
 0x2cb   : > { %790 = dma.done.wait (!%p558_p3), %s402_s21, 16  }
 0x2cc   : > { %792 = vsyncadd (!%p558_p3), %s402_s21, 4294967280  ;;  %p21_p7 = scmp.ge.s32.totalorder %s955_s10, 4   ;;  %s1149_s15 = smov %s799_s16 }
 0x2cd   : > { %s1150_s16 = smov %s803_s17  ;;  %s1151_s17 = smov %s971_s13 }
 0x2ce   : > { %s1152_s18 = smov %s955_s10  ;;  %23 = sbr.rel (!%p21_p7) target bundleno = 8 (0x8), region = 102 }
 0x2d5   :  { %406 = vsyncpa [#allocation3], 1 }
 0x2d6   :  { %408 = vsyncpa [#allocation3 + $0x1], 1 }
 0x2d7   :  { %409 = vsyncpa [#allocation6], 1 }
 0x2d8   :  { %411 = vsyncpa [#allocation6 + $0x1], 1 }
 0x2d9   :  { %412 = vsyncpa [#allocation9], 1 }
 0x2da   :  { %413 = vsyncpa [#allocation4], 1 }
 0x2db   :  { %415 = vsyncpa [#allocation4 + $0x1], 1 }

</bundles_post_ra>
